<compile_context>
chip_gen: v7x
topology: tpu7x:2x2x1
jax: 0.10.0
libtpu: 0.0.40
codegen_flags: <defaults>
</compile_context>

<pallas_src>
import functools
import math

import jax
import jax.numpy as jnp
import numpy as np
from jax.experimental import pallas as pl
from jax.experimental.pallas import tpu as pltpu

_LANE = 128
# Per-step VMEM ~= 88 B/lane (two (10,BN) f32 intermediates pad to 16 sublanes
# + double-buffered x/y).  64K lanes ~= 5.5 MiB: comfortably pipelined on
# v5e/v6e (128 MiB VMEM) and v7x (64 MiB VMEM).
_BN_MAX = 65536


def _sigmoid(x):
    # One EUP transcendental per element (tanh) instead of exp + reciprocal.
    return 0.5 * jnp.tanh(0.5 * x) + 0.5


def fcn3l_kernel(x_ref, p_ref, o_ref):
    x = x_ref[...]                      # (1, BN)   batch on lanes
    p = p_ref[...]                      # (10, 16)  packed params

    w1 = p[:, 10:11]                    # (10, 1)
    b1 = p[:, 11:12]                    # (10, 1)
    b2 = p[:, 12:13]                    # (10, 1)
    w3 = p[:, 13:14]                    # (10, 1)
    b3 = p[0:1, 14:15]                  # (1, 1)

    # fc1 (in=1): outer-product broadcast multiply-add on the VPU (no MXU).
    h1 = _sigmoid(w1 * x + b1)                               # (10, BN)

    # fc2 (10x10): contraction unrolled as 10 broadcast FMAs on the VPU.
    acc = b2 + p[:, 0:1] * h1[0:1, :]
    for k in range(1, 10):
        acc = acc + p[:, k:k + 1] * h1[k:k + 1, :]
    h2 = _sigmoid(acc)                                       # (10, BN)

    # fc3 (10 -> 1): VPU multiply + reduction over the 10 sublane rows.
    y = jnp.sum(w3 * h2, axis=0, keepdims=True) + b3         # (1, BN)
    o_ref[...] = y.astype(o_ref.dtype)


def pack_params(params):
    """Pack the six parameter tensors into one (10, 16) array (do ONCE at init)."""
    w1, b1, w2, b2, w3, b3 = params
    packed = jnp.zeros((10, 16), jnp.float32)
    packed = packed.at[:, 0:10].set(w2)
    packed = packed.at[:, 10].set(w1[:, 0])
    packed = packed.at[:, 11].set(b1)
    packed = packed.at[:, 12].set(b2)
    packed = packed.at[:, 13].set(w3[0, :])
    packed = packed.at[:, 14].set(b3[0])
    return packed


@functools.partial(jax.jit, static_argnames=("block_n",))
def fcn3l_forward(x, packed, block_n=None):
    """x: (N, 1) float32, packed: (10, 16) pre-packed params. Returns (N, 1)."""
    n = x.shape[0]
    x2d = x.reshape(n, -1)                       # matches x.reshape(x.size(0), -1)

    if block_n is None:
        block_n = min(_BN_MAX, ((n + _LANE - 1) // _LANE) * _LANE)
    assert block_n % _LANE == 0
    n_pad = ((n + block_n - 1) // block_n) * block_n
    grid = (n_pad // block_n,)

    # Lane-major, zero-padded batch (single pad HLO; fused under jit).
    x_lane = jnp.pad(x2d[:, 0].reshape(1, n), ((0, 0), (0, n_pad - n)))

    out = pl.pallas_call(
        fcn3l_kernel,
        out_shape=jax.ShapeDtypeStruct((1, n_pad), jnp.float32),
        grid=grid,
        in_specs=[pl.BlockSpec((1, block_n), lambda i: (0, i)),
                  pl.BlockSpec((10, 16), lambda i: (0, 0))],   # params: full block
        out_specs=pl.BlockSpec((1, block_n), lambda i: (0, i)),
        compiler_params=pltpu.CompilerParams(
            dimension_semantics=("parallel",)),                # megacore on v7x
    )(x_lane, packed)                            # (1, n_pad)

    return out[0, :n].reshape(n, 1)


def init_params(key):
    """Deterministic init mimicking PyTorch nn.Linear default (U[-1/sqrt(fan_in), +])."""
    def linear(key, fan_in, fan_out):
        kw, kb = jax.random.split(key)
        bound = 1.0 / math.sqrt(fan_in)
        w = jax.random.uniform(kw, (fan_out, fan_in), jnp.float32, -bound, bound)
        b = jax.random.uniform(kb, (fan_out,), jnp.float32, -bound, bound)
        return w, b

    k1, k2, k3 = jax.random.split(key, 3)
    w1, b1 = linear(k1, 1, 10)     # (10, 1), (10,)
    w2, b2 = linear(k2, 10, 10)    # (10, 10), (10,)
    w3, b3 = linear(k3, 10, 1)     # (1, 10), (1,)
    return (w1, b1, w2, b2, w3, b3)


def fcn3l_reference(x, params):
    w1, b1, w2, b2, w3, b3 = params
    hi = jax.lax.Precision.HIGHEST
    x = x.reshape(x.shape[0], -1)
    h1 = jax.nn.sigmoid(jnp.dot(x, w1.T, precision=hi) + b1)
    h2 = jax.nn.sigmoid(jnp.dot(h1, w2.T, precision=hi) + b2)
    return jnp.dot(h2, w3.T, precision=hi) + b3


if __name__ == "__main__":
    fsampling = 350
    # x = torch.unsqueeze(torch.linspace(0, 2*pi, fsampling), dim=1) -> (350, 1)
    x = jnp.linspace(0.0, 2.0 * np.pi, fsampling, dtype=jnp.float32).reshape(fsampling, 1)

    params = init_params(jax.random.PRNGKey(0))
    packed = jax.block_until_ready(pack_params(params))   # packed once, outside the per-call path

    # Module-sized run (grid collapses to one step).
    out = jax.block_until_ready(fcn3l_forward(x, packed))
    ref = fcn3l_reference(x, params)
    assert out.shape == (fsampling, 1), out.shape
    assert jnp.allclose(out, ref, atol=1e-5, rtol=1e-5), float(jnp.max(jnp.abs(out - ref)))

    # Exercise the lane-blocked multi-step grid path (grid > 1) at a modest size.
    x2 = jax.random.uniform(jax.random.PRNGKey(1), (1000, 1), jnp.float32, 0.0, 2.0 * np.pi)
    out2 = jax.block_until_ready(fcn3l_forward(x2, packed, block_n=256))  # n_pad=1024, grid=(4,)
    ref2 = fcn3l_reference(x2, params)
    assert out2.shape == (1000, 1), out2.shape
    assert jnp.allclose(out2, ref2, atol=1e-5, rtol=1e-5), float(jnp.max(jnp.abs(out2 - ref2)))

    print("KERNEL_OK")
</pallas_src>

<mosaic_0001>
module attributes {stable_mosaic.version = 11 : i64} {
  func.func @fcn3l_kernel(%arg0: i32, %arg1: memref<1x384xf32, #tpu.memory_space<vmem>>, %arg2: memref<10x16xf32, #tpu.memory_space<vmem>>, %arg3: memref<1x384xf32, #tpu.memory_space<vmem>>) attributes {dimension_semantics = [#tpu.dimension_semantics<parallel>], iteration_bounds = array<i64: 1>, scalar_prefetch = 0 : i64, scratch_operands = 0 : i64, tpu.core_type = #tpu.core_type<tc>, window_params = [{transform_indices = @transform_0, window_bounds = array<i64: 1, 384>}, {pipeline_mode = #tpu.pipeline_mode<synchronous>, transform_indices = @transform_1, window_bounds = array<i64: 10, 16>}, {transform_indices = @transform_2, window_bounds = array<i64: 1, 384>}]} {
    %c0 = arith.constant 0 : index
    %c0_0 = arith.constant 0 : index
    %0 = vector.load %arg1[%c0, %c0_0] : memref<1x384xf32, #tpu.memory_space<vmem>>, vector<1x384xf32>
    %c0_1 = arith.constant 0 : index
    %c0_2 = arith.constant 0 : index
    %1 = vector.load %arg2[%c0_1, %c0_2] : memref<10x16xf32, #tpu.memory_space<vmem>>, vector<10x16xf32>
    %2 = vector.extract_strided_slice %1 {offsets = [0, 10], sizes = [10, 1], strides = [1, 1]} : vector<10x16xf32> to vector<10x1xf32>
    %3 = vector.extract_strided_slice %1 {offsets = [0, 11], sizes = [10, 1], strides = [1, 1]} : vector<10x16xf32> to vector<10x1xf32>
    %4 = vector.extract_strided_slice %1 {offsets = [0, 12], sizes = [10, 1], strides = [1, 1]} : vector<10x16xf32> to vector<10x1xf32>
    %5 = vector.extract_strided_slice %1 {offsets = [0, 13], sizes = [10, 1], strides = [1, 1]} : vector<10x16xf32> to vector<10x1xf32>
    %6 = vector.extract_strided_slice %1 {offsets = [0, 14], sizes = [1, 1], strides = [1, 1]} : vector<10x16xf32> to vector<1x1xf32>
    %7 = vector.broadcast %2 : vector<10x1xf32> to vector<10x384xf32>
    %8 = vector.broadcast %0 : vector<1x384xf32> to vector<10x384xf32>
    %9 = arith.mulf %7, %8 : vector<10x384xf32>
    %10 = vector.broadcast %3 : vector<10x1xf32> to vector<10x384xf32>
    %11 = arith.addf %9, %10 : vector<10x384xf32>
    %cst = arith.constant 5.000000e-01 : f32
    %12 = vector.broadcast %cst : f32 to vector<10x384xf32>
    %13 = arith.mulf %12, %11 : vector<10x384xf32>
    %14 = math.tanh %13 : vector<10x384xf32>
    %cst_3 = arith.constant 5.000000e-01 : f32
    %15 = vector.broadcast %cst_3 : f32 to vector<10x384xf32>
    %16 = arith.mulf %15, %14 : vector<10x384xf32>
    %cst_4 = arith.constant 5.000000e-01 : f32
    %17 = vector.broadcast %cst_4 : f32 to vector<10x384xf32>
    %18 = arith.addf %16, %17 : vector<10x384xf32>
    %19 = vector.extract_strided_slice %1 {offsets = [0, 0], sizes = [10, 1], strides = [1, 1]} : vector<10x16xf32> to vector<10x1xf32>
    %20 = vector.extract_strided_slice %18 {offsets = [0, 0], sizes = [1, 384], strides = [1, 1]} : vector<10x384xf32> to vector<1x384xf32>
    %21 = vector.broadcast %19 : vector<10x1xf32> to vector<10x384xf32>
    %22 = vector.broadcast %20 : vector<1x384xf32> to vector<10x384xf32>
    %23 = arith.mulf %21, %22 : vector<10x384xf32>
    %24 = vector.broadcast %4 : vector<10x1xf32> to vector<10x384xf32>
    %25 = arith.addf %24, %23 : vector<10x384xf32>
    %26 = vector.extract_strided_slice %1 {offsets = [0, 1], sizes = [10, 1], strides = [1, 1]} : vector<10x16xf32> to vector<10x1xf32>
    %27 = vector.extract_strided_slice %18 {offsets = [1, 0], sizes = [1, 384], strides = [1, 1]} : vector<10x384xf32> to vector<1x384xf32>
    %28 = vector.broadcast %26 : vector<10x1xf32> to vector<10x384xf32>
    %29 = vector.broadcast %27 : vector<1x384xf32> to vector<10x384xf32>
    %30 = arith.mulf %28, %29 : vector<10x384xf32>
    %31 = arith.addf %25, %30 : vector<10x384xf32>
    %32 = vector.extract_strided_slice %1 {offsets = [0, 2], sizes = [10, 1], strides = [1, 1]} : vector<10x16xf32> to vector<10x1xf32>
    %33 = vector.extract_strided_slice %18 {offsets = [2, 0], sizes = [1, 384], strides = [1, 1]} : vector<10x384xf32> to vector<1x384xf32>
    %34 = vector.broadcast %32 : vector<10x1xf32> to vector<10x384xf32>
    %35 = vector.broadcast %33 : vector<1x384xf32> to vector<10x384xf32>
    %36 = arith.mulf %34, %35 : vector<10x384xf32>
    %37 = arith.addf %31, %36 : vector<10x384xf32>
    %38 = vector.extract_strided_slice %1 {offsets = [0, 3], sizes = [10, 1], strides = [1, 1]} : vector<10x16xf32> to vector<10x1xf32>
    %39 = vector.extract_strided_slice %18 {offsets = [3, 0], sizes = [1, 384], strides = [1, 1]} : vector<10x384xf32> to vector<1x384xf32>
    %40 = vector.broadcast %38 : vector<10x1xf32> to vector<10x384xf32>
    %41 = vector.broadcast %39 : vector<1x384xf32> to vector<10x384xf32>
    %42 = arith.mulf %40, %41 : vector<10x384xf32>
    %43 = arith.addf %37, %42 : vector<10x384xf32>
    %44 = vector.extract_strided_slice %1 {offsets = [0, 4], sizes = [10, 1], strides = [1, 1]} : vector<10x16xf32> to vector<10x1xf32>
    %45 = vector.extract_strided_slice %18 {offsets = [4, 0], sizes = [1, 384], strides = [1, 1]} : vector<10x384xf32> to vector<1x384xf32>
    %46 = vector.broadcast %44 : vector<10x1xf32> to vector<10x384xf32>
    %47 = vector.broadcast %45 : vector<1x384xf32> to vector<10x384xf32>
    %48 = arith.mulf %46, %47 : vector<10x384xf32>
    %49 = arith.addf %43, %48 : vector<10x384xf32>
    %50 = vector.extract_strided_slice %1 {offsets = [0, 5], sizes = [10, 1], strides = [1, 1]} : vector<10x16xf32> to vector<10x1xf32>
    %51 = vector.extract_strided_slice %18 {offsets = [5, 0], sizes = [1, 384], strides = [1, 1]} : vector<10x384xf32> to vector<1x384xf32>
    %52 = vector.broadcast %50 : vector<10x1xf32> to vector<10x384xf32>
    %53 = vector.broadcast %51 : vector<1x384xf32> to vector<10x384xf32>
    %54 = arith.mulf %52, %53 : vector<10x384xf32>
    %55 = arith.addf %49, %54 : vector<10x384xf32>
    %56 = vector.extract_strided_slice %1 {offsets = [0, 6], sizes = [10, 1], strides = [1, 1]} : vector<10x16xf32> to vector<10x1xf32>
    %57 = vector.extract_strided_slice %18 {offsets = [6, 0], sizes = [1, 384], strides = [1, 1]} : vector<10x384xf32> to vector<1x384xf32>
    %58 = vector.broadcast %56 : vector<10x1xf32> to vector<10x384xf32>
    %59 = vector.broadcast %57 : vector<1x384xf32> to vector<10x384xf32>
    %60 = arith.mulf %58, %59 : vector<10x384xf32>
    %61 = arith.addf %55, %60 : vector<10x384xf32>
    %62 = vector.extract_strided_slice %1 {offsets = [0, 7], sizes = [10, 1], strides = [1, 1]} : vector<10x16xf32> to vector<10x1xf32>
    %63 = vector.extract_strided_slice %18 {offsets = [7, 0], sizes = [1, 384], strides = [1, 1]} : vector<10x384xf32> to vector<1x384xf32>
    %64 = vector.broadcast %62 : vector<10x1xf32> to vector<10x384xf32>
    %65 = vector.broadcast %63 : vector<1x384xf32> to vector<10x384xf32>
    %66 = arith.mulf %64, %65 : vector<10x384xf32>
    %67 = arith.addf %61, %66 : vector<10x384xf32>
    %68 = vector.extract_strided_slice %1 {offsets = [0, 8], sizes = [10, 1], strides = [1, 1]} : vector<10x16xf32> to vector<10x1xf32>
    %69 = vector.extract_strided_slice %18 {offsets = [8, 0], sizes = [1, 384], strides = [1, 1]} : vector<10x384xf32> to vector<1x384xf32>
    %70 = vector.broadcast %68 : vector<10x1xf32> to vector<10x384xf32>
    %71 = vector.broadcast %69 : vector<1x384xf32> to vector<10x384xf32>
    %72 = arith.mulf %70, %71 : vector<10x384xf32>
    %73 = arith.addf %67, %72 : vector<10x384xf32>
    %74 = vector.extract_strided_slice %1 {offsets = [0, 9], sizes = [10, 1], strides = [1, 1]} : vector<10x16xf32> to vector<10x1xf32>
    %75 = vector.extract_strided_slice %18 {offsets = [9, 0], sizes = [1, 384], strides = [1, 1]} : vector<10x384xf32> to vector<1x384xf32>
    %76 = vector.broadcast %74 : vector<10x1xf32> to vector<10x384xf32>
    %77 = vector.broadcast %75 : vector<1x384xf32> to vector<10x384xf32>
    %78 = arith.mulf %76, %77 : vector<10x384xf32>
    %79 = arith.addf %73, %78 : vector<10x384xf32>
    %cst_5 = arith.constant 5.000000e-01 : f32
    %80 = vector.broadcast %cst_5 : f32 to vector<10x384xf32>
    %81 = arith.mulf %80, %79 : vector<10x384xf32>
    %82 = math.tanh %81 : vector<10x384xf32>
    %cst_6 = arith.constant 5.000000e-01 : f32
    %83 = vector.broadcast %cst_6 : f32 to vector<10x384xf32>
    %84 = arith.mulf %83, %82 : vector<10x384xf32>
    %cst_7 = arith.constant 5.000000e-01 : f32
    %85 = vector.broadcast %cst_7 : f32 to vector<10x384xf32>
    %86 = arith.addf %84, %85 : vector<10x384xf32>
    %87 = vector.broadcast %5 : vector<10x1xf32> to vector<10x384xf32>
    %88 = arith.mulf %87, %86 : vector<10x384xf32>
    %cst_8 = arith.constant dense<0.000000e+00> : vector<384xf32>
    %89 = vector.multi_reduction <add>, %88, %cst_8 [0] : vector<10x384xf32> to vector<384xf32>
    %90 = vector.shape_cast %89 : vector<384xf32> to vector<1x384xf32>
    %91 = vector.broadcast %6 : vector<1x1xf32> to vector<1x384xf32>
    %92 = arith.addf %90, %91 : vector<1x384xf32>
    %c0_9 = arith.constant 0 : index
    %c0_10 = arith.constant 0 : index
    %93 = vector.load %arg3[%c0_9, %c0_10] : memref<1x384xf32, #tpu.memory_space<vmem>>, vector<1x384xf32>
    tpu.vector_store %arg3[%c0_9, %c0_10], %92 {strides = array<i32>} : memref<1x384xf32, #tpu.memory_space<vmem>>, vector<1x384xf32>,
    return
  }
  func.func @transform_0(%arg0: i32) -> (i32, i32) {
    %c0_i32 = arith.constant 0 : i32
    %c0_i32_0 = arith.constant 0 : i32
    return %c0_i32, %arg0 : i32, i32
  }
  func.func @transform_1(%arg0: i32) -> (i32, i32) {
    %c0_i32 = arith.constant 0 : i32
    %c0_i32_0 = arith.constant 0 : i32
    %c0_i32_1 = arith.constant 0 : i32
    return %c0_i32, %c0_i32_0 : i32, i32
  }
  func.func @transform_2(%arg0: i32) -> (i32, i32) {
    %c0_i32 = arith.constant 0 : i32
    %c0_i32_0 = arith.constant 0 : i32
    return %c0_i32, %arg0 : i32, i32
  }
}

</mosaic_0001>

<bundles_post_ra>
// kernel: fcn3l_forward.1
= control target key start
LH: loop header
LB: loop body
LE: loop exit
PB: predicated region body
PF: predicated region fallthrough
CT: control target
= control target key end

     0   :  { %7 = vsyncpa [#allocation3], 0  ;;  %s626_s9 = smov [#allocation2]   ;;  %s832_s0 = inlined_call_operand.vmem [shape: f32[1,384], index: 0, kind: input, shape index: {}]   ;;  %s833_s1 = inlined_call_operand.hbm [shape: f32[10,16], index: 1, kind: input, shape index: {}]   ;;  %s834_s2 = inlined_call_operand.vmem [shape: f32[1,384], index: 2, kind: output, shape index: {}]  }
   0x1   :  { %s15_s10 = sshll.u32 %s626_s9, 4  ;;  %s602_s13 = scalar_lea.hbm %s833_s1, 256  ;;  %s16_s10 = int_to_ptr.vmem [resolvable:$true] %s15_s10 }
   0x2   :  { %p603_p0 = scmp.ne.s32.totalorder %s833_s1, %s602_s13  ;;  %p606_p1 = scmp.lt.u32.totalorder %s602_s13, %s833_s1 }
   0x4   :  { %p608_p2 = pnand %p606_p1, %p603_p0 }
   0x6   :  { %611 = shalt.err (!%p608_p2)
}
   0x7   :  { %s612_s18 = scalar_lea.vmem %s16_s10, 256  ;;  %p617_p4 = scmp.lt.s32.totalorder %s16_s10, %s16_s10 }
   0x8   :  { %p613_p3 = scmp.ne.s32.totalorder %s16_s10, %s612_s18  ;;  %p618_p5 = scmp.lt.s32.totalorder %s612_s18, %s612_s18 }
   0xa   :  { %p619_p6 = por %p618_p5, %p617_p4 }
   0xc   :  { %p620_p7 = pnand %p619_p6, %p613_p3 }
   0xe   :  { %623 = shalt.err (!%p620_p7)
}
   0xf   :  { %s627_s19 = smov 128   ;;  %s628_s20 = smov 8  }
  0x10   :  { %21 = dma.hbm_to_vmem [thread:$0]  %s833_s1, 256, %s16_s10, [#allocation3], %s627_s19, %s627_s19, %s628_s20  }
  0x11   :  { %624 = dma.done.wait [#allocation3], 256  }
  0x12   :  { %625 = vsyncadd [#allocation3], 4294967040  ;;  %v629_v0 = vmov 10   ;;  %v672_v1 = vld [vmem:[#allocation2] sm:$0xff]  ;;  %v27_v2 = vld [vmem:[#allocation2 + $0x8] sm:$0x3]  ;;  %v39_v17 = vlaneseq }
  0x13   :  { %554 = vset.pattern.permute.xlu1 %v629_v0  ;;  %552 = vset.pattern.permute.xlu0 %v629_v0  ;;  %v630_v3 = vmov 11   ;;  %v631_v4 = vmov 0   ;;  %v632_v5 = vmov 12   ;;  %v633_v6 = vmov 1   ;;  %v25_v21 = vld [vmem:[%s832_s0] sm:$0x7] }
  0x14   :  { %35 = vperm.xlu1 %554, %v27_v2   ;;  %30 = vperm.xlu0 %552, %v672_v1   ;;  %v634_v7 = vmov 2   ;;  %v635_v8 = vmov 4   ;;  %v636_v9 = vmov 5   ;;  %v637_v10 = vmov 3  }
  0x15   :  { %v638_v11 = vmov 7   ;;  %v639_v12 = vmov 8   ;;  %v640_v13 = vmov 13   ;;  %v641_v14 = vmov 14  }
  0x16   :  { %v642_v15 = vmov 6   ;;  %v643_v16 = vmov 9   ;;  %v690_v18 = vshrl.u32 %v39_v17, 7  ;;  %vm464_vm0 = vcmask 1041408  }
  0x17   :  { %vm525_vm1 = vcmp.lt.s32.totalorder %v39_v17, 384 }
  0x18   :  { %555 = vset.pattern.permute.xlu1 %v630_v3  ;;  %553 = vset.pattern.permute.xlu0 %v630_v3  ;;  %v693_v19 = vsub.s32 0, %v690_v18  ;;  %v696_v20 = vsub.s32 1, %v690_v18  ;;  %v702_v22 = vsub.s32 2, %v690_v18 }
  0x19   :  { %65 = vperm.xlu1 %555, %v27_v2   ;;  %61 = vperm.xlu0 %553, %v672_v1  }
  0x1a   :  { %v42_v24 = vrot.slane %v25_v21, %v693_v19  ;;  %v46_v26 = vrot.slane %v25_v21, %v696_v20  ;;  %v50_v27 = vrot.slane %v25_v21, %v702_v22 }
  0x1d   :  { %556 = vset.pattern.permute.xlu1 %v631_v4  ;;  %557 = vset.pattern.permute.xlu0 %v631_v4 }
  0x1e   :  { %103 = vperm.xlu1 %556, %v27_v2   ;;  %99 = vperm.xlu0 %557, %v672_v1  }
  0x22   :  { %558 = vset.pattern.permute.xlu1 %v632_v5  ;;  %560 = vset.pattern.permute.xlu0 %v632_v5 }
  0x23   :  { %129 = vperm.xlu1 %558, %v27_v2   ;;  %125 = vperm.xlu0 %560, %v672_v1  }
  0x27   :  { %559 = vset.pattern.permute.xlu1 %v633_v6  ;;  %562 = vset.pattern.permute.xlu0 %v634_v7 }
  0x28   :  { %143 = vperm.xlu1 %559, %v27_v2   ;;  %171 = vperm.xlu0 %562, %v672_v1  }
  0x2c   :  { %139 = vperm.xlu1 %559, %v672_v1   ;;  %564 = vset.pattern.permute.xlu0 %v635_v8 }
  0x2d   :  { %239 = vperm.xlu0 %564, %v27_v2  }
  0x30   :  { %561 = vset.pattern.permute.xlu1 %v634_v7 }
  0x31   :  { %175 = vperm.xlu1 %561, %v27_v2   ;;  %567 = vset.pattern.permute.xlu0 %v636_v9 }
  0x32   :  { %267 = vperm.xlu0 %567, %v672_v1  }
  0x35   :  { %563 = vset.pattern.permute.xlu1 %v637_v10 }
  0x36   :  { %207 = vperm.xlu1 %563, %v27_v2   ;;  %569 = vset.pattern.permute.xlu0 %v638_v11 }
  0x37   :  { %335 = vperm.xlu0 %569, %v27_v2  }
  0x3a   :  { %203 = vperm.xlu1 %563, %v672_v1  }
  0x3b   :  { %572 = vset.pattern.permute.xlu0 %v639_v12 }
  0x3c   :  { %363 = vperm.xlu0 %572, %v672_v1  }
  0x3e   :  { %565 = vset.pattern.permute.xlu1 %v635_v8 }
  0x3f   :  { %235 = vperm.xlu1 %565, %v672_v1  }
  0x40   :  { %574 = vset.pattern.permute.xlu0 %v640_v13 }
  0x41   :  { %455 = vperm.xlu0 %574, %v27_v2  }
  0x43   :  { %566 = vset.pattern.permute.xlu1 %v636_v9 }
  0x44   :  { %271 = vperm.xlu1 %566, %v27_v2  }
  0x45   :  { %577 = vset.pattern.permute.xlu0 %v641_v14 }
  0x48   :  { %568 = vset.pattern.permute.xlu1 %v642_v15 }
  0x49   :  { %303 = vperm.xlu1 %568, %v27_v2  }
  0x4d   :  { %299 = vperm.xlu1 %568, %v672_v1  }
  0x51   :  { %570 = vset.pattern.permute.xlu1 %v638_v11  ;;  %v244_v11 = vsub.s32 4, %v690_v18 }
  0x52   :  { %331 = vperm.xlu1 %570, %v672_v1  }
  0x56   :  { %571 = vset.pattern.permute.xlu1 %v639_v12 }
  0x57   :  { %367 = vperm.xlu1 %571, %v27_v2  }
  0x5b   :  { %573 = vset.pattern.permute.xlu1 %v643_v16  ;;  %v212_v16 = vsub.s32 3, %v690_v18 }
  0x5c   :  { %399 = vperm.xlu1 %573, %v27_v2  }
  0x60   :  { %395 = vperm.xlu1 %573, %v672_v1  }
  0x64   :  { %575 = vset.pattern.permute.xlu1 %v640_v13 }
  0x65   :  { %451 = vperm.xlu1 %575, %v672_v1  }
  0x69   :  { %576 = vset.pattern.permute.xlu1 %v641_v14 }
  0x6a   :  { %490 = vperm.xlu1 %576, %v672_v1  }
  0x93   :  { %v36_v23 = vpop.permute.xlu1 %35  ;;  %v31_v25 = vpop.permute.xlu0 %30 }
  0x94   :  { %v54_v28 = vmul.f32 %v42_v24, %v31_v25  ;;  %v55_v29 = vmul.f32 %v46_v26, %v31_v25  ;;  %v56_v30 = vmul.f32 %v50_v27, %v31_v25  ;;  %v57_v39 = vmul.f32 %v42_v24, %v36_v23 }
  0x95   :  { %v58_v41 = vmul.f32 %v46_v26, %v36_v23  ;;  %v59_v43 = vmul.f32 %v50_v27, %v36_v23  ;;  %v735_v23 = vsub.s32 5, %v690_v18  ;;  %v738_v24 = vsub.s32 7, %v690_v18 }
  0x96   :  { %v741_v25 = vsub.s32 6, %v690_v18 }
  0x98   :  { %v66_v31 = vpop.permute.xlu1 %65  ;;  %v62_v32 = vpop.permute.xlu0 %61 }
  0x99   :  { %v68_v33 = vadd.f32 %v62_v32, %v54_v28  ;;  %v69_v34 = vadd.f32 %v62_v32, %v55_v29  ;;  %v70_v35 = vadd.f32 %v62_v32, %v56_v30  ;;  %v71_v42 = vadd.f32 %v66_v31, %v57_v39 }
  0x9a   :  { %v72_v45 = vadd.f32 %v66_v31, %v58_v41  ;;  %v73_v46 = vadd.f32 %v66_v31, %v59_v43 }
  0x9b   :  { %v74_v36 = vmul.f32 0.5, %v68_v33  ;;  %v75_v38 = vmul.f32 0.5, %v69_v34  ;;  %v76_v40 = vmul.f32 0.5, %v70_v35  ;;  %v77_v47 = vmul.f32 0.5, %v71_v42 }
  0x9c   :  { %v78_v48 = vmul.f32 0.5, %v72_v45  ;;  %v79_v50 = vmul.f32 0.5, %v73_v46 }
  0x9d   :  { %v707_v37 = vpop.permute.xlu1 %103  ;;  %578 = vtanh.f32 %v74_v36  ;;  %v100_v59 = vpop.permute.xlu0 %99 }
  0x9e   :  { %580 = vtanh.f32 %v75_v38 }
  0x9f   :  { %582 = vtanh.f32 %v76_v40 }
  0xa0   :  { %584 = vtanh.f32 %v77_v47 }
  0xa1   :  { %586 = vtanh.f32 %v78_v48 }
  0xa2   :  { %v709_v44 = vpop.permute.xlu1 %129  ;;  %588 = vtanh.f32 %v79_v50  ;;  %v126_v7 = vpop.permute.xlu0 %125 }
  0xa7   :  { %v711_v49 = vpop.permute.xlu1 %143  ;;  %v579_v51 = vpop.eup %578 }
  0xa8   :  { %v581_v53 = vpop.eup %580  ;;  %v86_v55 = vmul.f32 0.5, %v579_v51  ;;  %v172_v32 = vpop.permute.xlu0 %171 }
  0xa9   :  { %v583_v54 = vpop.eup %582  ;;  %v87_v56 = vmul.f32 0.5, %v581_v53 }
  0xaa   :  { %v88_v57 = vmul.f32 0.5, %v583_v54  ;;  %v585_v60 = vpop.eup %584  ;;  %v715_v61 = vadd.f32 0.5, %v86_v55 }
  0xab   :  { %v140_v52 = vpop.permute.xlu1 %139  ;;  %v717_v62 = vadd.f32 0.5, %v87_v56  ;;  %v587_v0 = vpop.eup %586  ;;  %v89_v3 = vmul.f32 0.5, %v585_v60 }
  0xac   :  { %v719_v63 = vadd.f32 0.5, %v88_v57  ;;  %v589_v2 = vpop.eup %588  ;;  %v109_v4 = vrot.slane %v715_v61, %v693_v19  ;;  %v90_v8 = vmul.f32 0.5, %v587_v0  ;;  %v149_v26 = vrot.slane %v715_v61, %v696_v20 }
  0xad   :  { %v113_v5 = vrot.slane %v717_v62, %v693_v19  ;;  %v91_v9 = vmul.f32 0.5, %v589_v2  ;;  %v95_v12 = vadd.f32 0.5, %v89_v3  ;;  %v153_v27 = vrot.slane %v717_v62, %v696_v20 }
  0xae   :  { %v117_v6 = vrot.slane %v719_v63, %v693_v19  ;;  %v121_v13 = vmul.f32 %v109_v4, %v707_v37  ;;  %v118_v14 = vmul.f32 %v109_v4, %v100_v59  ;;  %v747_v28 = vadd.f32 0.5, %v90_v8  ;;  %v240_v4 = vpop.permute.xlu0 %239 }
  0xaf   :  { %v119_v15 = vmul.f32 %v113_v5, %v100_v59  ;;  %v749_v29 = vadd.f32 0.5, %v91_v9  ;;  %v122_v30 = vmul.f32 %v113_v5, %v707_v37  ;;  %v157_v31 = vrot.slane %v719_v63, %v696_v20 }
  0xb0   :  { %v713_v58 = vpop.permute.xlu1 %175  ;;  %v120_v21 = vmul.f32 %v117_v6, %v100_v59  ;;  %v755_v33 = vrot.slane %v95_v12, %v693_v19  ;;  %v760_v35 = vrot.slane %v95_v12, %v696_v20  ;;  %v123_v36 = vmul.f32 %v117_v6, %v707_v37 }
  0xb1   :  { %v135_v38 = vadd.f32 %v709_v44, %v121_v13  ;;  %v132_v39 = vadd.f32 %v126_v7, %v118_v14  ;;  %v133_v40 = vadd.f32 %v126_v7, %v119_v15  ;;  %v181_v42 = vrot.slane %v715_v61, %v702_v22 }
  0xb2   :  { %v134_v41 = vadd.f32 %v126_v7, %v120_v21  ;;  %v185_v43 = vrot.slane %v717_v62, %v702_v22  ;;  %v245_v45 = vrot.slane %v715_v61, %v244_v11  ;;  %v161_v46 = vmul.f32 %v149_v26, %v711_v49 }
  0xb3   :  { %v158_v47 = vmul.f32 %v149_v26, %v140_v52  ;;  %v159_v48 = vmul.f32 %v153_v27, %v140_v52  ;;  %v189_v37 = vrot.slane %v719_v63, %v702_v22  ;;  %v136_v50 = vadd.f32 %v709_v44, %v122_v30 }
  0xb4   :  { %v162_v51 = vmul.f32 %v153_v27, %v711_v49  ;;  %v163_v53 = vmul.f32 %v157_v31, %v711_v49  ;;  %v160_v54 = vmul.f32 %v157_v31, %v140_v52  ;;  %v137_v55 = vadd.f32 %v709_v44, %v123_v36 }
  0xb5   :  { %v721_v1 = vpop.permute.xlu1 %207  ;;  %v167_v56 = vadd.f32 %v161_v46, %v135_v38  ;;  %v164_v57 = vadd.f32 %v158_v47, %v132_v39  ;;  %v165_v59 = vadd.f32 %v159_v48, %v133_v40  ;;  %v190_v2 = vmul.f32 %v181_v42, %v172_v32  ;;  %v268_v39 = vpop.permute.xlu0 %267 }
  0xb6   :  { %v166_v0 = vadd.f32 %v160_v54, %v134_v41  ;;  %v191_v3 = vmul.f32 %v185_v43, %v172_v32  ;;  %v213_v5 = vrot.slane %v715_v61, %v212_v16  ;;  %v192_v22 = vmul.f32 %v189_v37, %v172_v32 }
  0xb7   :  { %v249_v6 = vrot.slane %v717_v62, %v244_v11  ;;  %v253_v7 = vrot.slane %v719_v63, %v244_v11  ;;  %v217_v49 = vrot.slane %v717_v62, %v212_v16  ;;  %v168_v52 = vadd.f32 %v162_v51, %v136_v50 }
  0xb8   :  { %v193_v44 = vmul.f32 %v181_v42, %v713_v58  ;;  %v194_v8 = vmul.f32 %v185_v43, %v713_v58  ;;  %v221_v9 = vrot.slane %v719_v63, %v212_v16  ;;  %v169_v12 = vadd.f32 %v163_v53, %v137_v55 }
  0xb9   :  { %v729_v10 = vpop.permute.xlu1 %203  ;;  %v195_v13 = vmul.f32 %v189_v37, %v713_v58  ;;  %v277_v14 = vrot.slane %v715_v61, %v735_v23  ;;  %v788_v15 = vrot.slane %v747_v28, %v693_v19  ;;  %v196_v11 = vadd.f32 %v190_v2, %v164_v57 }
  0xba   :  { %v197_v21 = vadd.f32 %v191_v3, %v165_v59  ;;  %v257_v26 = vmul.f32 %v245_v45, %v240_v4  ;;  %v225_v27 = vmul.f32 %v213_v5, %v721_v1  ;;  %v198_v31 = vadd.f32 %v192_v22, %v166_v0 }
  0xbb   :  { %v258_v32 = vmul.f32 %v249_v6, %v240_v4  ;;  %v259_v36 = vmul.f32 %v253_v7, %v240_v4  ;;  %v226_v16 = vmul.f32 %v217_v49, %v721_v1  ;;  %v199_v38 = vadd.f32 %v193_v44, %v167_v56 }
  0xbc   :  { %v200_v58 = vadd.f32 %v194_v8, %v168_v52  ;;  %v281_v40 = vrot.slane %v717_v62, %v735_v23  ;;  %v227_v41 = vmul.f32 %v221_v9, %v721_v1  ;;  %v201_v42 = vadd.f32 %v195_v13, %v169_v12 }
  0xbd   :  { %v285_v43 = vrot.slane %v719_v63, %v735_v23  ;;  %v286_v46 = vmul.f32 %v277_v14, %v268_v39  ;;  %v222_v47 = vmul.f32 %v213_v5, %v729_v10  ;;  %v231_v48 = vadd.f32 %v225_v27, %v199_v38 }
  0xbe   :  { %v757_v34 = vpop.permute.xlu1 %235  ;;  %v341_v37 = vrot.slane %v715_v61, %v738_v24  ;;  %v345_v50 = vrot.slane %v717_v62, %v738_v24  ;;  %v309_v51 = vrot.slane %v715_v61, %v741_v25  ;;  %v232_v54 = vadd.f32 %v226_v16, %v200_v58 }
  0xbf   :  { %v223_v1 = vmul.f32 %v217_v49, %v729_v10  ;;  %v224_v55 = vmul.f32 %v221_v9, %v729_v10  ;;  %v313_v23 = vrot.slane %v717_v62, %v741_v25  ;;  %v233_v56 = vadd.f32 %v227_v41, %v201_v42  ;;  %v336_v9 = vpop.permute.xlu0 %335 }
  0xc0   :  { %v254_v57 = vmul.f32 %v245_v45, %v757_v34  ;;  %v317_v0 = vrot.slane %v719_v63, %v741_v25  ;;  %v349_v2 = vrot.slane %v719_v63, %v738_v24  ;;  %v228_v61 = vadd.f32 %v222_v47, %v196_v11 }
  0xc1   :  { %v255_v3 = vmul.f32 %v249_v6, %v757_v34  ;;  %v256_v5 = vmul.f32 %v253_v7, %v757_v34  ;;  %v263_v10 = vadd.f32 %v257_v26, %v231_v48  ;;  %v229_v62 = vadd.f32 %v223_v1, %v197_v21 }
  0xc2   :  { %v230_v52 = vadd.f32 %v224_v55, %v198_v31  ;;  %v264_v44 = vadd.f32 %v258_v32, %v232_v54  ;;  %v260_v12 = vadd.f32 %v254_v57, %v228_v61  ;;  %v265_v25 = vadd.f32 %v259_v36, %v233_v56 }
  0xc3   :  { %v272_v60 = vpop.permute.xlu1 %271  ;;  %v287_v63 = vmul.f32 %v281_v40, %v268_v39  ;;  %v288_v24 = vmul.f32 %v285_v43, %v268_v39  ;;  %v353_v11 = vmul.f32 %v341_v37, %v336_v9  ;;  %v261_v27 = vadd.f32 %v255_v3, %v229_v62 }
  0xc4   :  { %v289_v59 = vmul.f32 %v277_v14, %v272_v60  ;;  %v290_v4 = vmul.f32 %v281_v40, %v272_v60  ;;  %v291_v22 = vmul.f32 %v285_v43, %v272_v60  ;;  %v262_v16 = vadd.f32 %v256_v5, %v230_v52 }
  0xc5   :  { %v354_v60 = vmul.f32 %v345_v50, %v336_v9  ;;  %v381_v21 = vrot.slane %v749_v29, %v693_v19  ;;  %v355_v32 = vmul.f32 %v349_v2, %v336_v9  ;;  %v292_v58 = vadd.f32 %v286_v46, %v260_v12 }
  0xc6   :  { %v295_v13 = vadd.f32 %v289_v59, %v263_v10  ;;  %v296_v6 = vadd.f32 %v290_v4, %v264_v44  ;;  %v297_v34 = vadd.f32 %v291_v22, %v265_v25  ;;  %v293_v43 = vadd.f32 %v287_v63, %v261_v27 }
  0xc7   :  { %v294_v47 = vadd.f32 %v288_v24, %v262_v16  ;;  %v409_v46 = vrot.slane %v747_v28, %v696_v20 }
  0xc8   :  { %v304_v30 = vpop.permute.xlu1 %303 }
  0xc9   :  { %v321_v49 = vmul.f32 %v309_v51, %v304_v30  ;;  %v322_v45 = vmul.f32 %v313_v23, %v304_v30  ;;  %v323_v14 = vmul.f32 %v317_v0, %v304_v30 }
  0xcb   :  { %v327_v7 = vadd.f32 %v321_v49, %v295_v13  ;;  %v328_v26 = vadd.f32 %v322_v45, %v296_v6  ;;  %v329_v38 = vadd.f32 %v323_v14, %v297_v34 }
  0xcc   :  { %v300_v53 = vpop.permute.xlu1 %299 }
  0xcd   :  { %v318_v31 = vmul.f32 %v309_v51, %v300_v53  ;;  %v319_v36 = vmul.f32 %v313_v23, %v300_v53  ;;  %v320_v30 = vmul.f32 %v317_v0, %v300_v53  ;;  %v359_v48 = vadd.f32 %v353_v11, %v327_v7  ;;  %v364_v51 = vpop.permute.xlu0 %363 }
  0xce   :  { %v360_v56 = vadd.f32 %v354_v60, %v328_v26  ;;  %v361_v59 = vadd.f32 %v355_v32, %v329_v38  ;;  %v382_v10 = vmul.f32 %v755_v33, %v364_v51  ;;  %v383_v44 = vmul.f32 %v788_v15, %v364_v51 }
  0xcf   :  { %v324_v1 = vadd.f32 %v318_v31, %v292_v58  ;;  %v325_v57 = vadd.f32 %v319_v36, %v293_v43  ;;  %v326_v53 = vadd.f32 %v320_v30, %v294_v47 }
  0xd1   :  { %v332_v8 = vpop.permute.xlu1 %331  ;;  %v456_v26 = vpop.permute.xlu0 %455 }
  0xd2   :  { %v350_v40 = vmul.f32 %v341_v37, %v332_v8  ;;  %v351_v55 = vmul.f32 %v345_v50, %v332_v8  ;;  %v352_v19 = vmul.f32 %v349_v2, %v332_v8  ;;  %v413_v37 = vrot.slane %v749_v29, %v696_v20 }
  0xd3   :  { %v384_v20 = vmul.f32 %v381_v21, %v364_v51 }
  0xd4   :  { %v356_v23 = vadd.f32 %v350_v40, %v324_v1  ;;  %v357_v22 = vadd.f32 %v351_v55, %v325_v57  ;;  %v358_v49 = vadd.f32 %v352_v19, %v326_v53 }
  0xd6   :  { %v368_v41 = vpop.permute.xlu1 %367  ;;  %v388_v45 = vadd.f32 %v382_v10, %v356_v23  ;;  %v389_v13 = vadd.f32 %v383_v44, %v357_v22  ;;  %v390_v14 = vadd.f32 %v384_v20, %v358_v49  ;;  %v644_v22 = vmov 1966171168  }
  0xd7   :  { %v385_v39 = vmul.f32 %v755_v33, %v368_v41  ;;  %v386_v42 = vmul.f32 %v788_v15, %v368_v41  ;;  %v387_v54 = vmul.f32 %v381_v21, %v368_v41  ;;  %v501_v49 = vunpack.c.l.s4 %v644_v22 }
  0xd9   :  { %v391_v0 = vadd.f32 %v385_v39, %v359_v48  ;;  %v392_v61 = vadd.f32 %v386_v42, %v360_v56  ;;  %v393_v4 = vadd.f32 %v387_v54, %v361_v59 }
  0xdb   :  { %v400_v3 = vpop.permute.xlu1 %399 }
  0xdc   :  { %v417_v5 = vmul.f32 %v760_v35, %v400_v3  ;;  %v418_v50 = vmul.f32 %v409_v46, %v400_v3  ;;  %v419_v2 = vmul.f32 %v413_v37, %v400_v3 }
  0xde   :  { %v423_v62 = vadd.f32 %v417_v5, %v391_v0  ;;  %v424_v52 = vadd.f32 %v418_v50, %v392_v61  ;;  %v425_v28 = vadd.f32 %v419_v2, %v393_v4 }
  0xdf   :  { %v396_v29 = vpop.permute.xlu1 %395 }
  0xe0   :  { %v429_v8 = vmul.f32 0.5, %v423_v62  ;;  %v430_v9 = vmul.f32 0.5, %v424_v52  ;;  %v431_v12 = vmul.f32 0.5, %v425_v28  ;;  %v414_v25 = vmul.f32 %v760_v35, %v396_v29 }
  0xe1   :  { %v415_v63 = vmul.f32 %v409_v46, %v396_v29  ;;  %v416_v24 = vmul.f32 %v413_v37, %v396_v29 }
  0xe2   :  { %590 = vtanh.f32 %v429_v8  ;;  %v420_v33 = vadd.f32 %v414_v25, %v388_v45  ;;  %v502_v45 = vunpack.c.0.s8 %v501_v49 }
  0xe3   :  { %592 = vtanh.f32 %v430_v9  ;;  %v421_v11 = vadd.f32 %v415_v63, %v389_v13  ;;  %v422_v6 = vadd.f32 %v416_v24, %v390_v14 }
  0xe4   :  { %594 = vtanh.f32 %v431_v12  ;;  %v426_v27 = vmul.f32 0.5, %v420_v33  ;;  %v452_v42 = vpop.permute.xlu1 %451  ;;  %v505_v24 = vsub.s32 %v502_v45, %v690_v18 }
  0xe5   :  { %v427_v15 = vmul.f32 0.5, %v421_v11  ;;  %v428_v16 = vmul.f32 0.5, %v422_v6 }
  0xe6   :  { %596 = vtanh.f32 %v426_v27 }
  0xe7   :  { %598 = vtanh.f32 %v427_v15 }
  0xe8   :  { %600 = vtanh.f32 %v428_v16 }
  0xe9   :  { %v491_v8 = vpop.permute.xlu1 %490 }
  0xec   :  { %v591_v34 = vpop.eup %590 }
  0xed   :  { %v593_v7 = vpop.eup %592  ;;  %v441_v60 = vmul.f32 0.5, %v591_v34 }
  0xee   :  { %v595_v35 = vpop.eup %594  ;;  %v442_v21 = vmul.f32 0.5, %v593_v7 }
  0xef   :  { %v443_v31 = vmul.f32 0.5, %v595_v35  ;;  %v447_v32 = vadd.f32 0.5, %v441_v60 }
  0xf0   :  { %v597_v38 = vpop.eup %596  ;;  %v448_v58 = vadd.f32 0.5, %v442_v21 }
  0xf1   :  { %v599_v36 = vpop.eup %598  ;;  %v449_v41 = vadd.f32 0.5, %v443_v31  ;;  %v438_v30 = vmul.f32 0.5, %v597_v38  ;;  %v461_v39 = vmul.f32 %v456_v26, %v447_v32 }
  0xf2   :  { %v601_v40 = vpop.eup %600  ;;  %v439_v43 = vmul.f32 0.5, %v599_v36  ;;  %v462_v47 = vmul.f32 %v456_v26, %v448_v58 }
  0xf3   :  { %v440_v48 = vmul.f32 0.5, %v601_v40  ;;  %v444_v54 = vadd.f32 0.5, %v438_v30  ;;  %v463_v1 = vmul.f32 %v456_v26, %v449_v41  ;;  %v465_v51 = vsel %vm464_vm0, %v461_v39, 0.0 }
  0xf4   :  { %v445_v55 = vadd.f32 0.5, %v439_v43  ;;  %v473_v59 = vsel %vm464_vm0, %v462_v47, 0.0 }
  0xf5   :  { %v446_v19 = vadd.f32 0.5, %v440_v48  ;;  %v458_v56 = vmul.f32 %v452_v42, %v444_v54  ;;  %v481_v53 = vsel %vm464_vm0, %v463_v1, 0.0 }
  0xf6   :  { %v459_v57 = vmul.f32 %v452_v42, %v445_v55 }
  0xf7   :  { %v460_v46 = vmul.f32 %v452_v42, %v446_v19  ;;  %v466_v37 = vadd.f32 %v465_v51, %v458_v56 }
  0xf8   :  { %v474_v23 = vadd.f32 %v473_v59, %v459_v57 }
  0xf9   :  { %v467_v0 = vrot.slane %v466_v37, 4  ;;  %v482_v61 = vadd.f32 %v481_v53, %v460_v46 }
  0xfa   :  { %v475_v3 = vrot.slane %v474_v23, 4 }
  0xfb   :  { %v468_v4 = vadd.f32 %v467_v0, %v466_v37  ;;  %v483_v5 = vrot.slane %v482_v61, 4 }
  0xfc   :  { %v476_v50 = vadd.f32 %v475_v3, %v474_v23 }
  0xfd   :  { %v484_v2 = vadd.f32 %v483_v5, %v482_v61  ;;  %v469_v10 = vrot.slane %v468_v4, 2 }
  0xfe   :  { %v477_v62 = vrot.slane %v476_v50, 2 }
  0xff   :  { %v470_v52 = vadd.f32 %v469_v10, %v468_v4  ;;  %v485_v28 = vrot.slane %v484_v2, 2 }
 0x100   :  { %v478_v44 = vadd.f32 %v477_v62, %v476_v50 }
 0x101   :  { %v471_v20 = vrot.slane %v470_v52, 1  ;;  %v486_v29 = vadd.f32 %v485_v28, %v484_v2 }
 0x102   :  { %v479_v9 = vrot.slane %v478_v44, 1 }
 0x103   :  { %v472_v12 = vadd.f32 %v471_v20, %v470_v52  ;;  %v487_v25 = vrot.slane %v486_v29, 1 }
 0x104   :  { %v480_v13 = vadd.f32 %v479_v9, %v478_v44 }
 0x105   :  { %v488_v14 = vadd.f32 %v487_v25, %v486_v29  ;;  %v493_v63 = vadd.f32 %v491_v8, %v472_v12 }
 0x106   :  { %v494_v33 = vadd.f32 %v491_v8, %v480_v13 }
 0x107   :  { %v495_v11 = vadd.f32 %v491_v8, %v488_v14 }
 0x108   :  { %v499_v6 = vcombine.low %v493_v63, %v494_v33 }
 0x109   :  { %v513_v15 = vrot.slane %v495_v11, %v505_v24 }
 0x10a   :  { %v506_v27 = vrot.slane %v499_v6, %v505_v24 }
 0x10c   :  { %v514_v16 = vcombine.low %v506_v27, %v513_v15 }
 0x10e   :  { %v521_v34 = vrot.slane %v514_v16, %v505_v24 }
 0x110   :  { %527 = vst.msk [vmem:[%s834_s2] sm:$0x7] %vm525_vm1, %v521_v34 }
 0x111   :  { %532 = vsyncpa [#allocation3], 1 }

</bundles_post_ra>
